<compile_context>
chip_gen: v5e
topology: v5e:2x2
jax: 0.10.0
libtpu: 0.0.40
codegen_flags: <defaults>
</compile_context>

<pallas_src>
import jax
import jax.numpy as jnp
from jax.experimental import pallas as pl
from jax.experimental.pallas import tpu as pltpu


def single_scale_model_forward(x_nchw, params):
    conv_w = params["conv_w"]   # (3, 3, Cin, Cout)  HWIO
    conv_b = params["conv_b"]   # (1, Cout)
    emb_w = params["emb_w"]     # (Cout, E)
    emb_b = params["emb_b"]     # (1, E)
    fc_w = params["fc_w"]       # (E, C)
    fc_b = params["fc_b"]       # (1, C)

    B, Cin, H, W = x_nchw.shape
    Cout = conv_w.shape[-1]
    E = emb_w.shape[1]
    C = fc_w.shape[1]
    HW = H * W
    K = 9 * Cin                  # im2col contraction width (27 for Cin=3)
    KP = 32                      # zero-pad K to a sublane-friendly width
    inv_hw = 1.0 / float(HW)

    # ---- im2col in the wrapper: lane-dense LHS with K on lanes (one pass) ----
    x = jnp.transpose(x_nchw, (0, 2, 3, 1)).astype(jnp.float32)        # NHWC
    xp = jnp.pad(x, ((0, 0), (1, 1), (1, 1), (0, 0)))
    taps = [xp[:, dy:dy + H, dx:dx + W, :] for dy in range(3) for dx in range(3)]
    patches = jnp.concatenate(taps, axis=-1).reshape(B, HW, K)
    patches = jnp.pad(patches, ((0, 0), (0, 0), (0, KP - K))).astype(jnp.bfloat16)

    w_mat = jnp.pad(conv_w.reshape(K, Cout).astype(jnp.float32),
                    ((0, KP - K), (0, 0))).astype(jnp.bfloat16)        # (KP, Cout)
    emb_w_bf = emb_w.astype(jnp.bfloat16)
    fc_w_bf = fc_w.astype(jnp.bfloat16)
    conv_b_f = conv_b.astype(jnp.float32)
    emb_b_f = emb_b.astype(jnp.float32)
    fc_b_f = fc_b.astype(jnp.float32)

    def fused_kernel(patch_ref, cw_ref, cb_ref, ew_ref, eb_ref, fw_ref, fb_ref,
                     out_ref):
        # One matmul for the whole conv of this image: bf16 in, f32 accumulate.
        conv = jnp.dot(patch_ref[0], cw_ref[...],
                       preferred_element_type=jnp.float32)       # (HW, Cout)
        conv = jnp.maximum(conv + cb_ref[...], 0.0)              # bias + ReLU
        # Global average pool (f32 sublane reduction for accuracy).
        feat = jnp.sum(conv, axis=0, keepdims=True) * inv_hw     # (1, Cout)

        # Embedding Linear (dropout is identity in eval mode).
        emb = jnp.dot(feat.astype(jnp.bfloat16), ew_ref[...],
                      preferred_element_type=jnp.float32) + eb_ref[...]   # (1, E)

        # Classifier head + softmax + clamp.
        logits = jnp.dot(emb.astype(jnp.bfloat16), fw_ref[...],
                         preferred_element_type=jnp.float32) + fb_ref[...]  # (1, C)
        m = jnp.max(logits, axis=-1, keepdims=True)
        e = jnp.exp(logits - m)
        probs = e * pl.reciprocal(jnp.sum(e, axis=-1, keepdims=True), approx=True)
        out_ref[0] = jnp.clip(probs, 1e-07, 1.0 - 1e-07)

    # VMEM budget derived from actual tile sizes (double-buffered), capped for v7x.
    patch_block_bytes = HW * KP * 2
    weight_bytes = (KP * Cout + Cout * E + E * 128 + Cout + E + 128) * 2
    conv_act_bytes = HW * Cout * 4
    working_set = 2 * patch_block_bytes + 2 * weight_bytes + conv_act_bytes
    vmem_limit = int(min(max(4 * 1024 * 1024, 4 * working_set), 48 * 1024 * 1024))

    out = pl.pallas_call(
        fused_kernel,
        out_shape=jax.ShapeDtypeStruct((B, 1, C), jnp.float32),
        grid_spec=pltpu.PrefetchScalarGridSpec(
            num_scalar_prefetch=0,
            grid=(B,),
            in_specs=[
                pl.BlockSpec((1, HW, KP), lambda b: (b, 0, 0)),   # im2col patches
                pl.BlockSpec((KP, Cout), lambda b: (0, 0)),       # conv weights (resident)
                pl.BlockSpec((1, Cout), lambda b: (0, 0)),        # conv bias (resident)
                pl.BlockSpec((Cout, E), lambda b: (0, 0)),        # embedding W (resident)
                pl.BlockSpec((1, E), lambda b: (0, 0)),           # embedding b (resident)
                pl.BlockSpec((E, C), lambda b: (0, 0)),           # embedding_fc W (resident)
                pl.BlockSpec((1, C), lambda b: (0, 0)),           # embedding_fc b (resident)
            ],
            out_specs=pl.BlockSpec((1, 1, C), lambda b: (b, 0, 0)),
        ),
        compiler_params=pltpu.CompilerParams(
            dimension_semantics=("parallel",),
            vmem_limit_bytes=vmem_limit,
        ),
    )(patches, w_mat, conv_b_f, emb_w_bf, emb_b_f, fc_w_bf, fc_b_f)
    return out.reshape(B, C)


# Pure-JAX f32 reference for validation
def reference_forward(x_nchw, params):
    x = jnp.transpose(x_nchw, (0, 2, 3, 1)).astype(jnp.float32)
    conv = jax.lax.conv_general_dilated(
        x, params["conv_w"], window_strides=(1, 1), padding="SAME",
        dimension_numbers=("NHWC", "HWIO", "NHWC"))
    conv = jnp.maximum(conv + params["conv_b"][0], 0.0)
    feats = jnp.mean(conv, axis=(1, 2))
    emb = feats @ params["emb_w"] + params["emb_b"][0]
    logits = emb @ params["fc_w"] + params["fc_b"][0]
    probs = jax.nn.softmax(logits, axis=-1)
    return jnp.clip(probs, 1e-07, 1.0 - 1e-07)


if __name__ == "__main__":
    # Small shapes consistent with the module: resnet34-style head
    B, Cin, H, W = 2, 3, 16, 16
    FC_FEAT_IN = 512      # resnet34 fc.in_features
    E = 128               # resnet34 -> self.E = 128
    N_CLASSES = 4

    key = jax.random.PRNGKey(0)
    kx, kw, kb, kew, keb, kcw, kcb = jax.random.split(key, 7)

    x = jax.random.normal(kx, (B, Cin, H, W), jnp.float32)
    params = {
        "conv_w": 0.05 * jax.random.normal(kw, (3, 3, Cin, FC_FEAT_IN), jnp.float32),
        "conv_b": 0.01 * jax.random.normal(kb, (1, FC_FEAT_IN), jnp.float32),
        "emb_w": 0.05 * jax.random.normal(kew, (FC_FEAT_IN, E), jnp.float32),
        "emb_b": 0.01 * jax.random.normal(keb, (1, E), jnp.float32),
        "fc_w": 0.05 * jax.random.normal(kcw, (E, N_CLASSES), jnp.float32),
        "fc_b": 0.01 * jax.random.normal(kcb, (1, N_CLASSES), jnp.float32),
    }

    fwd = jax.jit(single_scale_model_forward)
    out = jax.block_until_ready(fwd(x, params))
    ref = jax.block_until_ready(reference_forward(x, params))

    assert out.shape == (B, N_CLASSES)
    assert bool(jnp.all(jnp.isfinite(out)))
    # bf16 MXU operands (f32 accumulation) -> slightly looser tolerance vs f32 ref
    assert jnp.allclose(out, ref, atol=3e-3, rtol=3e-3), (out, ref)

    print("KERNEL_OK")
</pallas_src>

<mosaic_0001>
module attributes {stable_mosaic.version = 11 : i64} {
  func.func @fused_kernel(%arg0: i32, %arg1: memref<1x256x32xbf16, #tpu.memory_space<vmem>>, %arg2: memref<32x512xbf16, #tpu.memory_space<vmem>>, %arg3: memref<1x512xf32, #tpu.memory_space<vmem>>, %arg4: memref<512x128xbf16, #tpu.memory_space<vmem>>, %arg5: memref<1x128xf32, #tpu.memory_space<vmem>>, %arg6: memref<128x4xbf16, #tpu.memory_space<vmem>>, %arg7: memref<1x4xf32, #tpu.memory_space<vmem>>, %arg8: memref<1x1x4xf32, #tpu.memory_space<vmem>>) attributes {dimension_semantics = [#tpu.dimension_semantics<parallel>], iteration_bounds = array<i64: 2>, scalar_prefetch = 0 : i64, scratch_operands = 0 : i64, tpu.core_type = #tpu.core_type<tc>, window_params = [{transform_indices = @transform_0, window_bounds = array<i64: 1, 256, 32>}, {pipeline_mode = #tpu.pipeline_mode<synchronous>, transform_indices = @transform_1, window_bounds = array<i64: 32, 512>}, {pipeline_mode = #tpu.pipeline_mode<synchronous>, transform_indices = @transform_2, window_bounds = array<i64: 1, 512>}, {pipeline_mode = #tpu.pipeline_mode<synchronous>, transform_indices = @transform_3, window_bounds = array<i64: 512, 128>}, {pipeline_mode = #tpu.pipeline_mode<synchronous>, transform_indices = @transform_4, window_bounds = array<i64: 1, 128>}, {pipeline_mode = #tpu.pipeline_mode<synchronous>, transform_indices = @transform_5, window_bounds = array<i64: 128, 4>}, {pipeline_mode = #tpu.pipeline_mode<synchronous>, transform_indices = @transform_6, window_bounds = array<i64: 1, 4>}, {transform_indices = @transform_7, window_bounds = array<i64: 1, 1, 4>}]} {
    %c0 = arith.constant 0 : index
    %c0_0 = arith.constant 0 : index
    %c0_1 = arith.constant 0 : index
    %0 = vector.load %arg1[%c0, %c0_0, %c0_1] : memref<1x256x32xbf16, #tpu.memory_space<vmem>>, vector<1x256x32xbf16>
    %1 = vector.shape_cast %0 : vector<1x256x32xbf16> to vector<256x32xbf16>
    %c0_2 = arith.constant 0 : index
    %c0_3 = arith.constant 0 : index
    %2 = vector.load %arg2[%c0_2, %c0_3] : memref<32x512xbf16, #tpu.memory_space<vmem>>, vector<32x512xbf16>
    %cst = arith.constant dense<0.000000e+00> : vector<256x512xf32>
    %3 = tpu.matmul %1, %2, %cst {dimension_numbers = #tpu.dot_dimension_numbers<[1], [0], [0], [1], [0, 0, 1, 1], [], []>} : vector<256x32xbf16>, vector<32x512xbf16>, vector<256x512xf32> -> vector<256x512xf32>
    %c0_4 = arith.constant 0 : index
    %c0_5 = arith.constant 0 : index
    %4 = vector.load %arg3[%c0_4, %c0_5] : memref<1x512xf32, #tpu.memory_space<vmem>>, vector<1x512xf32>
    %5 = vector.broadcast %4 : vector<1x512xf32> to vector<256x512xf32>
    %6 = arith.addf %3, %5 : vector<256x512xf32>
    %cst_6 = arith.constant 0.000000e+00 : f32
    %7 = vector.broadcast %cst_6 : f32 to vector<256x512xf32>
    %8 = arith.maximumf %6, %7 : vector<256x512xf32>
    %cst_7 = arith.constant dense<0.000000e+00> : vector<512xf32>
    %9 = vector.multi_reduction <add>, %8, %cst_7 [0] : vector<256x512xf32> to vector<512xf32>
    %10 = vector.shape_cast %9 : vector<512xf32> to vector<1x512xf32>
    %cst_8 = arith.constant 3.906250e-03 : f32
    %11 = vector.broadcast %cst_8 : f32 to vector<1x512xf32>
    %12 = arith.mulf %10, %11 : vector<1x512xf32>
    %13 = arith.truncf %12 : vector<1x512xf32> to vector<1x512xbf16>
    %c0_9 = arith.constant 0 : index
    %c0_10 = arith.constant 0 : index
    %14 = vector.load %arg4[%c0_9, %c0_10] : memref<512x128xbf16, #tpu.memory_space<vmem>>, vector<512x128xbf16>
    %cst_11 = arith.constant dense<0.000000e+00> : vector<1x128xf32>
    %15 = tpu.matmul %13, %14, %cst_11 {dimension_numbers = #tpu.dot_dimension_numbers<[1], [0], [0], [1], [0, 0, 1, 1], [], []>} : vector<1x512xbf16>, vector<512x128xbf16>, vector<1x128xf32> -> vector<1x128xf32>
    %c0_12 = arith.constant 0 : index
    %c0_13 = arith.constant 0 : index
    %16 = vector.load %arg5[%c0_12, %c0_13] : memref<1x128xf32, #tpu.memory_space<vmem>>, vector<1x128xf32>
    %17 = arith.addf %15, %16 : vector<1x128xf32>
    %18 = arith.truncf %17 : vector<1x128xf32> to vector<1x128xbf16>
    %c0_14 = arith.constant 0 : index
    %c0_15 = arith.constant 0 : index
    %19 = vector.load %arg6[%c0_14, %c0_15] : memref<128x4xbf16, #tpu.memory_space<vmem>>, vector<128x4xbf16>
    %cst_16 = arith.constant dense<0.000000e+00> : vector<1x4xf32>
    %20 = tpu.matmul %18, %19, %cst_16 {dimension_numbers = #tpu.dot_dimension_numbers<[1], [0], [0], [1], [0, 0, 1, 1], [], []>} : vector<1x128xbf16>, vector<128x4xbf16>, vector<1x4xf32> -> vector<1x4xf32>
    %c0_17 = arith.constant 0 : index
    %c0_18 = arith.constant 0 : index
    %21 = vector.load %arg7[%c0_17, %c0_18] : memref<1x4xf32, #tpu.memory_space<vmem>>, vector<1x4xf32>
    %22 = arith.addf %20, %21 : vector<1x4xf32>
    %cst_19 = arith.constant dense<0xFF800000> : vector<1xf32>
    %23 = vector.multi_reduction <maximumf>, %22, %cst_19 [1] : vector<1x4xf32> to vector<1xf32>
    %24 = vector.shape_cast %23 : vector<1xf32> to vector<1x1xf32>
    %25 = vector.broadcast %24 : vector<1x1xf32> to vector<1x4xf32>
    %26 = arith.subf %22, %25 : vector<1x4xf32>
    %27 = math.exp %26 : vector<1x4xf32>
    %cst_20 = arith.constant dense<0.000000e+00> : vector<1xf32>
    %28 = vector.multi_reduction <add>, %27, %cst_20 [1] : vector<1x4xf32> to vector<1xf32>
    %29 = vector.shape_cast %28 : vector<1xf32> to vector<1x1xf32>
    %30 = tpu.reciprocal %29 {approx = true} : vector<1x1xf32> -> vector<1x1xf32>
    %31 = vector.broadcast %30 : vector<1x1xf32> to vector<1x4xf32>
    %32 = arith.mulf %27, %31 : vector<1x4xf32>
    %cst_21 = arith.constant 1.000000e-07 : f32
    %cst_22 = arith.constant 0.99999988 : f32
    %33 = vector.broadcast %cst_21 : f32 to vector<1x4xf32>
    %34 = arith.maximumf %33, %32 : vector<1x4xf32>
    %35 = vector.broadcast %cst_22 : f32 to vector<1x4xf32>
    %36 = arith.minimumf %35, %34 : vector<1x4xf32>
    %c0_23 = arith.constant 0 : index
    %c0_24 = arith.constant 0 : index
    %c0_25 = arith.constant 0 : index
    %37 = vector.load %arg8[%c0_23, %c0_24, %c0_25] : memref<1x1x4xf32, #tpu.memory_space<vmem>>, vector<1x1x4xf32>
    %38 = vector.shape_cast %37 : vector<1x1x4xf32> to vector<1x4xf32>
    %39 = vector.shape_cast %36 : vector<1x4xf32> to vector<1x1x4xf32>
    tpu.vector_store %arg8[%c0_23, %c0_24, %c0_25], %39 {strides = array<i32>} : memref<1x1x4xf32, #tpu.memory_space<vmem>>, vector<1x1x4xf32>,
    return
  }
  func.func @transform_0(%arg0: i32) -> (i32, i32, i32) {
    %c0_i32 = arith.constant 0 : i32
    %c0_i32_0 = arith.constant 0 : i32
    %c0_i32_1 = arith.constant 0 : i32
    return %arg0, %c0_i32, %c0_i32_0 : i32, i32, i32
  }
  func.func @transform_1(%arg0: i32) -> (i32, i32) {
    %c0_i32 = arith.constant 0 : i32
    %c0_i32_0 = arith.constant 0 : i32
    %c0_i32_1 = arith.constant 0 : i32
    return %c0_i32, %c0_i32_0 : i32, i32
  }
  func.func @transform_2(%arg0: i32) -> (i32, i32) {
    %c0_i32 = arith.constant 0 : i32
    %c0_i32_0 = arith.constant 0 : i32
    %c0_i32_1 = arith.constant 0 : i32
    return %c0_i32, %c0_i32_0 : i32, i32
  }
  func.func @transform_3(%arg0: i32) -> (i32, i32) {
    %c0_i32 = arith.constant 0 : i32
    %c0_i32_0 = arith.constant 0 : i32
    %c0_i32_1 = arith.constant 0 : i32
    return %c0_i32, %c0_i32_0 : i32, i32
  }
  func.func @transform_4(%arg0: i32) -> (i32, i32) {
    %c0_i32 = arith.constant 0 : i32
    %c0_i32_0 = arith.constant 0 : i32
    %c0_i32_1 = arith.constant 0 : i32
    return %c0_i32, %c0_i32_0 : i32, i32
  }
  func.func @transform_5(%arg0: i32) -> (i32, i32) {
    %c0_i32 = arith.constant 0 : i32
    %c0_i32_0 = arith.constant 0 : i32
    %c0_i32_1 = arith.constant 0 : i32
    return %c0_i32, %c0_i32_0 : i32, i32
  }
  func.func @transform_6(%arg0: i32) -> (i32, i32) {
    %c0_i32 = arith.constant 0 : i32
    %c0_i32_0 = arith.constant 0 : i32
    %c0_i32_1 = arith.constant 0 : i32
    return %c0_i32, %c0_i32_0 : i32, i32
  }
  func.func @transform_7(%arg0: i32) -> (i32, i32, i32) {
    %c0_i32 = arith.constant 0 : i32
    %c0_i32_0 = arith.constant 0 : i32
    %c0_i32_1 = arith.constant 0 : i32
    return %arg0, %c0_i32, %c0_i32_0 : i32, i32, i32
  }
}

</mosaic_0001>

<bundles_post_ra>
// kernel: single_scale_model_forward.1
= control target key start
LH: loop header
LB: loop body
LE: loop exit
PB: predicated region body
PF: predicated region fallthrough
CT: control target
= control target key end

     0   :  { %12 = vsyncpa [#allocation3], 0  ;;  %s2722_s0 = inlined_call_operand.vmem [shape: bf16[2,256,32], index: 0, kind: input, shape index: {}]   ;;  %s2723_s1 = inlined_call_operand.vmem [shape: bf16[32,512], index: 1, kind: input, shape index: {}]   ;;  %s2724_s2 = inlined_call_operand.vmem [shape: f32[1,512], index: 2, kind: input, shape index: {}]   ;;  %s2725_s3 = inlined_call_operand.vmem [shape: bf16[512,128], index: 3, kind: input, shape index: {}]   ;;  %s2726_s4 = inlined_call_operand.vmem [shape: f32[1,128], index: 4, kind: input, shape index: {}]   ;;  %s2727_s5 = inlined_call_operand.vmem [shape: bf16[128,4], index: 5, kind: input, shape index: {}]   ;;  %s2728_s6 = inlined_call_operand.vmem [shape: f32[1,4], index: 6, kind: input, shape index: {}]   ;;  %s2729_s7 = inlined_call_operand.hbm [shape: f32[2,1,4], index: 7, kind: output, shape index: {}]  }
   0x1   :  { %14 = vsyncpa [#allocation3 + $0x1], 0  ;;  %s2149_s24 = smov 0   ;;  %s2151_s25 = smov 0  }
   0x2   :  { %s2153_s26 = smov 0   ;;  %s2155_s27 = smov 0  }
   0x3 LB: > { %s2170_s28 = sadd.s32 4294967295, %s2107_s27   ;;  %s1607_s29 = sadd.s32 4294967294, %s2107_s27   ;;  %s2107_s27 = sphi %s2155_s27, %s2735_s27   ;;  %s2103_s26 = sphi %s2153_s26, %s2734_s26   ;;  %s2099_s25 = sphi %s2151_s25, %s2733_s25   ;;  %s2095_s24 = sphi %s2149_s24, %s2732_s24  }
   0x4   : > { %s2174_s30 = sadd.s32 1, %s2107_s27   ;;  %s179_s8 = sadd.s32 1, %s2103_s26 }
   0x5   : > { %s176_s9 = ssub.s32 %s2107_s27, %s2174_s30  ;;  %p189_p0 = scmp.ne.s32.totalorder %s2103_s26, %s2099_s25 }
   0x6   : > { %p177_p1 = scmp.eq.s32.totalorder %s176_s9, 0  ;;  %p190_p2 = scmp.eq.s32.totalorder %s2170_s28, 1 }
   0x7   : > { %p195_p3 = scmp.ne.s32.totalorder %s2099_s25, %s2095_s24  ;;  %p196_p4 = scmp.eq.s32.totalorder %s1607_s29, 1 }
   0x8   : > { %s2185_s10 = scalar_select %p177_p1, %s2103_s26, %s179_s8  }
   0x9   : > { %p2187_p5 = por %p190_p2, %p189_p0  ;;  %p2191_p6 = por %p196_p4, %p195_p3 }
   0xa   : > { %p1610_p7 = scmp.ge.s32.totalorder %s2107_s27, 1  ;;  %p240_p8 = scmp.lt.s32.totalorder %s2107_s27, 3 }
   0xc   : > { %p241_p9 = pnand %p1610_p7, %p240_p8 }
   0xd   : > { %p271_p10 = scmp.lt.s32.totalorder (!%p241_p9), %s2170_s28, 1  ;;  %s1548_s14 = scalar_lea.hbm (!%p241_p9), %s2729_s7, %s2170_s28 }
   0xe   : > { %244 = sbr.rel (%p241_p9) target bundleno = 965 (0x3c5), region = 48  ;;  %s1552_s17 = sshll.u32 (!%p241_p9), %s1548_s14, 4  ;;  %s1553_s17 = int_to_ptr.hbm [resolvable:$true] %s1552_s17 }
   0xf   : > { %s2059_s19 = sshra.s32 (!%p241_p9), %s1553_s17, 4  ;;  %s2065_s23 = scalar_lea.hbm (!%p241_p9), %s2729_s7, 2  ;;  %s2060_s19 = int_to_ptr.hbm [resolvable:$true] %s2059_s19 }
  0x10   : > { %s2061_s20 = scalar_lea.hbm (!%p241_p9), %s2060_s19, 1  ;;  %p2066_p0 = scmp.lt.s32.totalorder (!%p241_p9), %s2060_s19, %s2729_s7 }
  0x11   : > { %p2062_p11 = scmp.ne.s32.totalorder (!%p241_p9), %s2060_s19, %s2061_s20  ;;  %p2067_p1 = scmp.lt.s32.totalorder (!%p241_p9), %s2065_s23, %s2061_s20 }
  0x13   : > { %v1695_v0 = vld [vmem:[%s2723_s1 + $0x20] sm:$0xf]  ;;  %v1958_v1 = vld [vmem:[%s2723_s1 + $0x2c] sm:$0xf0]  ;;  %v1703_v2 = vld [vmem:[%s2723_s1 + $0x28] sm:$0xf]  ;;  %p2063_p12 = pnand %p2062_p11, %p2187_p5  ;;  %p2068_p2 = por %p2067_p1, %p2066_p0 }
  0x14   : > { %v1696_v3 = vor.u32 %v1958_v1, %v1695_v0  ;;  %v1959_v4 = vld [vmem:[%s2723_s1 + $0x34] sm:$0xf0]  ;;  %v1957_v5 = vld [vmem:[%s2723_s1 + $0x2c] sm:$0xf]  ;;  %v1705_v6 = vld [vmem:[%s2723_s1 + $0x38] sm:$0xf0] }
  0x15   : > { %v1704_v7 = vor.u32 %v1959_v4, %v1703_v2  ;;  %v1708_v8 = vor.u32 %v1957_v5, %v1705_v6  ;;  %v1679_v9 = vld [vmem:[%s2723_s1] sm:$0xf]  ;;  %v1954_v10 = vld [vmem:[%s2723_s1 + $0xc] sm:$0xf0]  ;;  %v1687_v11 = vld [vmem:[%s2723_s1 + $0x8] sm:$0xf]  ;;  %p2064_p13 = pneg %p2063_p12 }
  0x16   : > { %502 = vmatpush.bf16.msra.mxu0 %v1696_v3  ;;  %2000 = vmatpush.bf16.msra.mxu1 %v1696_v3  ;;  %v1680_v12 = vor.u32 %v1954_v10, %v1679_v9  ;;  %v1955_v13 = vld [vmem:[%s2723_s1 + $0x14] sm:$0xf0]  ;;  %v1953_v14 = vld [vmem:[%s2723_s1 + $0xc] sm:$0xf]  ;;  %v1689_v15 = vld [vmem:[%s2723_s1 + $0x18] sm:$0xf0] }
  0x17   : > { %680 = vmatpush.bf16.msra.mxu2 %v1704_v7  ;;  %769 = vmatpush.bf16.msra.mxu3 %v1708_v8  ;;  %v1688_v16 = vor.u32 %v1955_v13, %v1687_v11  ;;  %v1692_v17 = vor.u32 %v1953_v14, %v1689_v15  ;;  %v1956_v18 = vld [vmem:[%s2723_s1 + $0x24] sm:$0xf]  ;;  %v1697_v19 = vld [vmem:[%s2723_s1 + $0x30] sm:$0xf0]  ;;  %s272_s13 = scalar_select %p271_p10, %s2170_s28, 1  ;;  %vm447_vm0 = vcmask 261120  }
  0x18   : > { %v1700_v20 = vor.u32 %v1956_v18, %v1697_v19  ;;  %v1952_v21 = vld [vmem:[%s2723_s1 + $0x4] sm:$0xf]  ;;  %v1681_v22 = vld [vmem:[%s2723_s1 + $0x10] sm:$0xf0]  ;;  %v1983_v33 = vld [vmem:[%s2725_s3 + $0xb8] sm:$0xff]  ;;  %vm1524_vm1 = vcmask 24576   ;;  %p2069_p3 = pnand %p2068_p2, %p2064_p13 }
  0x19   : > { %s1935_s18 = sshll.u32 %s272_s13, 7  ;;  %v1684_v25 = vor.u32 %v1952_v21, %v1681_v22  ;;  %v1991_v34 = vld [vmem:[%s2725_s3 + $0xf8] sm:$0xff]  ;;  %v317_v36 = vld [vmem:[%s2724_s2] sm:$0xf] }
  0x1a   : > { %503 = vmatpush.bf16.msra.mxu0 %v1680_v12  ;;  %2001 = vmatpush.bf16.msra.mxu1 %v1680_v12  ;;  %s2250_s21 = scalar_lea.vmem %s2722_s0, %s1935_s18  ;;  %v2308_v39 = vperm.slane %v317_v36, 0  ;;  %v1975_v40 = vld [vmem:[%s2725_s3 + $0x78] sm:$0xff]  ;;  %v2318_v44 = vperm.slane %v317_v36, 3  ;;  %v2323_v49 = vperm.slane %v317_v36, 2  ;;  %v2334_v4 = vperm.slane %v317_v36, 1 }
  0x1b   : > { %681 = vmatpush.bf16.msra.mxu2 %v1688_v16  ;;  %770 = vmatpush.bf16.msra.mxu3 %v1692_v17  ;;  %v1936_v23 = vld [vmem:[%s2250_s21] sm:$0xff]  ;;  %v2254_v24 = vld [vmem:[%s2250_s21 + $0x78] sm:$0xff]  ;;  %v1937_v26 = vld [vmem:[%s2250_s21 + $0x8] sm:$0xff] }
  0x1c   : > { %v1938_v27 = vld [vmem:[%s2250_s21 + $0x10] sm:$0xff]  ;;  %v1939_v28 = vld [vmem:[%s2250_s21 + $0x18] sm:$0xff]  ;;  %v1940_v29 = vld [vmem:[%s2250_s21 + $0x20] sm:$0xff] }
  0x1d   : > { %1709 = vmatmul.msk.bf16.vlgmr.msra.gmra.mxu0 %vm447_vm0, %v1936_v23  ;;  %1724 = vmatmul.msk.bf16.vlgmr.msra.gmra.mxu1 %vm447_vm0, %v2254_v24  ;;  %v1941_v30 = vld [vmem:[%s2250_s21 + $0x28] sm:$0xff]  ;;  %v1942_v31 = vld [vmem:[%s2250_s21 + $0x30] sm:$0xff]  ;;  %v1943_v32 = vld [vmem:[%s2250_s21 + $0x38] sm:$0xff] }
  0x1e   : > { %591 = vmatpush.bf16.msrb.mxu1 %v1700_v20  ;;  %1741 = vmatmul.msk.bf16.vlgmr.msra.gmra.mxu2 %vm447_vm0, %v1936_v23  ;;  %v1944_v35 = vld [vmem:[%s2250_s21 + $0x40] sm:$0xff]  ;;  %v1967_v53 = vld [vmem:[%s2725_s3 + $0x38] sm:$0xff]  ;;  %v1945_v57 = vld [vmem:[%s2250_s21 + $0x48] sm:$0xff] }
  0x1f   : > { %1757 = vmatmul.msk.bf16.vlgmr.msra.gmra.mxu3 %vm447_vm0, %v1936_v23  ;;  %1419 = vmatpush.bf16.msrb.mxu2 %v1983_v33 }
  0x20   : > { %1432 = vmatpush.bf16.msrb.mxu3 %v1991_v34  ;;  %1393 = vmatpush.bf16.msrb.mxu0 %v1967_v53 }
  0x22   : > { %592 = vmatpush.bf16.msrb.mxu1 %v1684_v25 }
  0x26   : > { %1406 = vmatpush.bf16.msra.mxu1 %v1975_v40 }
  0x2d   : > { %1710 = vmatmul.msk.bf16.gmra.mxu0 %vm447_vm0, %v1937_v26  ;;  %1725 = vmatmul.msk.bf16.vlgmr.msrb.gmra.mxu1 %vm447_vm0, %v1936_v23 }
  0x2e   : > { %1742 = vmatmul.msk.bf16.gmra.mxu2 %vm447_vm0, %v1937_v26 }
  0x2f   : > { %1758 = vmatmul.msk.bf16.gmra.mxu3 %vm447_vm0, %v1937_v26 }
  0x3d   : > { %1711 = vmatmul.msk.bf16.gmra.mxu0 %vm447_vm0, %v1938_v27  ;;  %1726 = vmatmul.msk.bf16.gmra.mxu1 %vm447_vm0, %v1937_v26 }
  0x3e   : > { %1743 = vmatmul.msk.bf16.gmra.mxu2 %vm447_vm0, %v1938_v27 }
  0x3f   : > { %1759 = vmatmul.msk.bf16.gmra.mxu3 %vm447_vm0, %v1938_v27 }
  0x4d   : > { %1712 = vmatmul.msk.bf16.gmra.mxu0 %vm447_vm0, %v1939_v28  ;;  %1727 = vmatmul.msk.bf16.gmra.mxu1 %vm447_vm0, %v1938_v27  ;;  %v1982_v27 = vld [vmem:[%s2725_s3 + $0xb0] sm:$0xff] }
  0x4e   : > { %1744 = vmatmul.msk.bf16.gmra.mxu2 %vm447_vm0, %v1939_v28 }
  0x4f   : > { %1760 = vmatmul.msk.bf16.gmra.mxu3 %vm447_vm0, %v1939_v28  ;;  %1420 = vmatpush.bf16.msrb.mxu2 %v1982_v27 }
  0x5d   : > { %1713 = vmatmul.msk.bf16.gmra.mxu0 %vm447_vm0, %v1940_v29  ;;  %1728 = vmatmul.msk.bf16.gmra.mxu1 %vm447_vm0, %v1939_v28  ;;  %v1990_v28 = vld [vmem:[%s2725_s3 + $0xf0] sm:$0xff] }
  0x5e   : > { %1745 = vmatmul.msk.bf16.gmra.mxu2 %vm447_vm0, %v1940_v29  ;;  %1433 = vmatpush.bf16.msrb.mxu3 %v1990_v28 }
  0x5f   : > { %1761 = vmatmul.msk.bf16.gmra.mxu3 %vm447_vm0, %v1940_v29 }
  0x6d   : > { %1714 = vmatmul.msk.bf16.gmra.mxu0 %vm447_vm0, %v1941_v30  ;;  %1729 = vmatmul.msk.bf16.gmra.mxu1 %vm447_vm0, %v1940_v29 }
  0x6e   : > { %1746 = vmatmul.msk.bf16.gmra.mxu2 %vm447_vm0, %v1941_v30 }
  0x6f   : > { %1762 = vmatmul.msk.bf16.gmra.mxu3 %vm447_vm0, %v1941_v30 }
  0x7d   : > { %1715 = vmatmul.msk.bf16.gmra.mxu0 %vm447_vm0, %v1942_v31  ;;  %1730 = vmatmul.msk.bf16.gmra.mxu1 %vm447_vm0, %v1941_v30 }
  0x7e   : > { %1747 = vmatmul.msk.bf16.gmra.mxu2 %vm447_vm0, %v1942_v31 }
  0x7f   : > { %1763 = vmatmul.msk.bf16.gmra.mxu3 %vm447_vm0, %v1942_v31 }
  0x8d   : > { %1716 = vmatmul.msk.bf16.gmra.mxu0 %vm447_vm0, %v1943_v32  ;;  %1731 = vmatmul.msk.bf16.gmra.mxu1 %vm447_vm0, %v1942_v31  ;;  %v1946_v31 = vld [vmem:[%s2250_s21 + $0x50] sm:$0xff] }
  0x8e   : > { %1748 = vmatmul.msk.bf16.gmra.mxu2 %vm447_vm0, %v1943_v32 }
  0x8f   : > { %1764 = vmatmul.msk.bf16.gmra.mxu3 %vm447_vm0, %v1943_v32 }
  0x9a   : > { %v505_v37 = vpop.f32.mrf.mxu0  ;;  %v2306_v38 = vpop.f32.mrf.mxu1 }
  0x9b   : > { %v506_v41 = vadd.f32 %v505_v37, %v2308_v39 }
  0x9d   : > { %1717 = vmatmul.msk.bf16.gmra.mxu0 %vm447_vm0, %v1944_v35  ;;  %1732 = vmatmul.msk.bf16.gmra.mxu1 %vm447_vm0, %v1943_v32  ;;  %v852_v47 = vmax.f32 %v506_v41, 0.0 }
  0x9e   : > { %1749 = vmatmul.msk.bf16.gmra.mxu2 %vm447_vm0, %v1944_v35 }
  0x9f   : > { %1765 = vmatmul.msk.bf16.gmra.mxu3 %vm447_vm0, %v1944_v35 }
  0xa1   : > { %v683_v42 = vpop.f32.mrf.mxu2 }
  0xa2   : > { %v772_v43 = vpop.f32.mrf.mxu3  ;;  %v507_v45 = vpop.f32.mrf.mxu0  ;;  %v684_v54 = vadd.f32 %v683_v42, %v2323_v49 }
  0xa3   : > { %v2320_v46 = vpop.f32.mrf.mxu1  ;;  %v508_v48 = vadd.f32 %v507_v45, %v2308_v39  ;;  %v773_v51 = vadd.f32 %v772_v43, %v2318_v44 }
  0xa4   : > { %v854_v0 = vmax.f32 %v684_v54, 0.0 }
  0xa5   : > { %v856_v50 = vmax.f32 %v508_v48, 0.0  ;;  %v855_v58 = vmax.f32 %v773_v51, 0.0  ;;  %v1974_v48 = vld [vmem:[%s2725_s3 + $0x70] sm:$0xff] }
  0xa6   : > { %1407 = vmatpush.bf16.msra.mxu1 %v1974_v48 }
  0xa7   : > { %v980_v52 = vadd.f32 %v856_v50, %v852_v47 }
  0xa9   : > { %v685_v55 = vpop.f32.mrf.mxu2 }
  0xaa   : > { %v774_v56 = vpop.f32.mrf.mxu3  ;;  %v686_v59 = vadd.f32 %v685_v55, %v2323_v49  ;;  %v510_v61 = vpop.f32.mrf.mxu0 }
  0xab   : > { %v775_v60 = vadd.f32 %v774_v56, %v2318_v44  ;;  %v594_v62 = vpop.f32.mrf.mxu1  ;;  %v511_v63 = vadd.f32 %v510_v61, %v2308_v39 }
  0xac   : > { %v858_v1 = vmax.f32 %v686_v59, 0.0  ;;  %v595_v8 = vadd.f32 %v594_v62, %v2334_v4 }
  0xad   : > { %v859_v2 = vmax.f32 %v775_v60, 0.0  ;;  %v860_v3 = vmax.f32 %v511_v63, 0.0  ;;  %1718 = vmatmul.msk.bf16.gmra.mxu0 %vm447_vm0, %v1945_v57  ;;  %1733 = vmatmul.msk.bf16.gmra.mxu1 %vm447_vm0, %v1944_v35 }
  0xae   : > { %v1054_v5 = vadd.f32 %v858_v1, %v854_v0  ;;  %1750 = vmatmul.msk.bf16.gmra.mxu2 %vm447_vm0, %v1945_v57  ;;  %v853_v19 = vmax.f32 %v595_v8, 0.0  ;;  %v1947_v8 = vld [vmem:[%s2250_s21 + $0x58] sm:$0xff] }
  0xaf   : > { %v1091_v6 = vadd.f32 %v859_v2, %v855_v58  ;;  %1766 = vmatmul.msk.bf16.gmra.mxu3 %vm447_vm0, %v1945_v57  ;;  %v981_v7 = vadd.f32 %v980_v52, %v860_v3 }
  0xb1   : > { %v688_v9 = vpop.f32.mrf.mxu2 }
  0xb2   : > { %v777_v10 = vpop.f32.mrf.mxu3  ;;  %v689_v11 = vadd.f32 %v688_v9, %v2323_v49  ;;  %v512_v13 = vpop.f32.mrf.mxu0 }
  0xb3   : > { %v778_v12 = vadd.f32 %v777_v10, %v2318_v44  ;;  %v596_v14 = vpop.f32.mrf.mxu1  ;;  %v513_v15 = vadd.f32 %v512_v13, %v2308_v39 }
  0xb4   : > { %v597_v16 = vadd.f32 %v596_v14, %v2334_v4  ;;  %v862_v17 = vmax.f32 %v689_v11, 0.0 }
  0xb5   : > { %v863_v18 = vmax.f32 %v778_v12, 0.0  ;;  %v864_v20 = vmax.f32 %v513_v15, 0.0 }
  0xb6   : > { %v857_v21 = vmax.f32 %v597_v16, 0.0  ;;  %v1055_v22 = vadd.f32 %v1054_v5, %v862_v17  ;;  %v1966_v5 = vld [vmem:[%s2725_s3 + $0x30] sm:$0xff] }
  0xb7   : > { %v1092_v23 = vadd.f32 %v1091_v6, %v863_v18  ;;  %v982_v25 = vadd.f32 %v981_v7, %v864_v20  ;;  %1394 = vmatpush.bf16.msrb.mxu0 %v1966_v5 }
  0xb8   : > { %v1017_v26 = vadd.f32 %v857_v21, %v853_v19 }
  0xb9   : > { %v690_v29 = vpop.f32.mrf.mxu2 }
  0xba   : > { %v779_v30 = vpop.f32.mrf.mxu3  ;;  %v691_v32 = vadd.f32 %v690_v29, %v2323_v49  ;;  %v515_v34 = vpop.f32.mrf.mxu0 }
  0xbb   : > { %v780_v33 = vadd.f32 %v779_v30, %v2318_v44  ;;  %v599_v35 = vpop.f32.mrf.mxu1  ;;  %v516_v36 = vadd.f32 %v515_v34, %v2308_v39 }
  0xbc   : > { %v600_v37 = vadd.f32 %v599_v35, %v2334_v4  ;;  %v866_v40 = vmax.f32 %v691_v32, 0.0 }
  0xbd   : > { %v867_v41 = vmax.f32 %v780_v33, 0.0  ;;  %v868_v42 = vmax.f32 %v516_v36, 0.0  ;;  %1719 = vmatmul.msk.bf16.gmra.mxu0 %vm447_vm0, %v1946_v31  ;;  %1734 = vmatmul.msk.bf16.gmra.mxu1 %vm447_vm0, %v1945_v57 }
  0xbe   : > { %v861_v43 = vmax.f32 %v600_v37, 0.0  ;;  %v1056_v45 = vadd.f32 %v1055_v22, %v866_v40  ;;  %1751 = vmatmul.msk.bf16.gmra.mxu2 %vm447_vm0, %v1946_v31  ;;  %v1981_v40 = vld [vmem:[%s2725_s3 + $0xa8] sm:$0xff] }
  0xbf   : > { %v1093_v47 = vadd.f32 %v1092_v23, %v867_v41  ;;  %1767 = vmatmul.msk.bf16.gmra.mxu3 %vm447_vm0, %v1946_v31  ;;  %v983_v50 = vadd.f32 %v982_v25, %v868_v42  ;;  %v1989_v41 = vld [vmem:[%s2725_s3 + $0xe8] sm:$0xff]  ;;  %1421 = vmatpush.bf16.msrb.mxu2 %v1981_v40 }
  0xc0   : > { %v1018_v51 = vadd.f32 %v1017_v26, %v861_v43  ;;  %1434 = vmatpush.bf16.msrb.mxu3 %v1989_v41 }
  0xc1   : > { %v693_v52 = vpop.f32.mrf.mxu2 }
  0xc2   : > { %v782_v53 = vpop.f32.mrf.mxu3  ;;  %v694_v54 = vadd.f32 %v693_v52, %v2323_v49  ;;  %v517_v56 = vpop.f32.mrf.mxu0 }
  0xc3   : > { %v783_v55 = vadd.f32 %v782_v53, %v2318_v44  ;;  %v601_v57 = vpop.f32.mrf.mxu1  ;;  %v518_v58 = vadd.f32 %v517_v56, %v2308_v39 }
  0xc4   : > { %v602_v59 = vadd.f32 %v601_v57, %v2334_v4  ;;  %v870_v60 = vmax.f32 %v694_v54, 0.0 }
  0xc5   : > { %v871_v61 = vmax.f32 %v783_v55, 0.0  ;;  %v872_v62 = vmax.f32 %v518_v58, 0.0 }
  0xc6   : > { %v865_v63 = vmax.f32 %v602_v59, 0.0  ;;  %v1057_v0 = vadd.f32 %v1056_v45, %v870_v60 }
  0xc7   : > { %v1094_v1 = vadd.f32 %v1093_v47, %v871_v61  ;;  %v984_v2 = vadd.f32 %v983_v50, %v872_v62  ;;  %v1948_v47 = vld [vmem:[%s2250_s21 + $0x60] sm:$0xff]  ;;  %v1973_v62 = vld [vmem:[%s2725_s3 + $0x68] sm:$0xff] }
  0xc8   : > { %v1019_v3 = vadd.f32 %v1018_v51, %v865_v63  ;;  %1408 = vmatpush.bf16.msra.mxu1 %v1973_v62 }
  0xc9   : > { %v695_v6 = vpop.f32.mrf.mxu2 }
  0xca   : > { %v784_v7 = vpop.f32.mrf.mxu3  ;;  %v696_v9 = vadd.f32 %v695_v6, %v2323_v49  ;;  %v520_v11 = vpop.f32.mrf.mxu0 }
  0xcb   : > { %v785_v10 = vadd.f32 %v784_v7, %v2318_v44  ;;  %v604_v12 = vpop.f32.mrf.mxu1  ;;  %v521_v13 = vadd.f32 %v520_v11, %v2308_v39 }
  0xcc   : > { %v605_v14 = vadd.f32 %v604_v12, %v2334_v4  ;;  %v874_v15 = vmax.f32 %v696_v9, 0.0 }
  0xcd   : > { %v875_v16 = vmax.f32 %v785_v10, 0.0  ;;  %v876_v17 = vmax.f32 %v521_v13, 0.0  ;;  %1720 = vmatmul.msk.bf16.gmra.mxu0 %vm447_vm0, %v1947_v8  ;;  %1735 = vmatmul.msk.bf16.gmra.mxu1 %vm447_vm0, %v1946_v31 }
  0xce   : > { %v869_v18 = vmax.f32 %v605_v14, 0.0  ;;  %v1058_v19 = vadd.f32 %v1057_v0, %v874_v15  ;;  %1752 = vmatmul.msk.bf16.gmra.mxu2 %vm447_vm0, %v1947_v8 }
  0xcf   : > { %v1095_v20 = vadd.f32 %v1094_v1, %v875_v16  ;;  %1768 = vmatmul.msk.bf16.gmra.mxu3 %vm447_vm0, %v1947_v8  ;;  %v985_v21 = vadd.f32 %v984_v2, %v876_v17  ;;  %v1965_v16 = vld [vmem:[%s2725_s3 + $0x28] sm:$0xff] }
  0xd0   : > { %v1020_v22 = vadd.f32 %v1019_v3, %v869_v18  ;;  %1395 = vmatpush.bf16.msrb.mxu0 %v1965_v16 }
  0xd1   : > { %v698_v23 = vpop.f32.mrf.mxu2 }
  0xd2   : > { %v787_v25 = vpop.f32.mrf.mxu3  ;;  %v699_v26 = vadd.f32 %v698_v23, %v2323_v49  ;;  %v522_v28 = vpop.f32.mrf.mxu0 }
  0xd3   : > { %v788_v27 = vadd.f32 %v787_v25, %v2318_v44  ;;  %v606_v29 = vpop.f32.mrf.mxu1  ;;  %v523_v33 = vadd.f32 %v522_v28, %v2308_v39 }
  0xd4   : > { %v607_v30 = vadd.f32 %v606_v29, %v2334_v4  ;;  %v878_v31 = vmax.f32 %v699_v26, 0.0 }
  0xd5   : > { %v879_v32 = vmax.f32 %v788_v27, 0.0  ;;  %v880_v42 = vmax.f32 %v523_v33, 0.0 }
  0xd6   : > { %v873_v34 = vmax.f32 %v607_v30, 0.0  ;;  %v1059_v35 = vadd.f32 %v1058_v19, %v878_v31 }
  0xd7   : > { %v1096_v36 = vadd.f32 %v1095_v20, %v879_v32  ;;  %v986_v57 = vadd.f32 %v985_v21, %v880_v42  ;;  %v1949_v20 = vld [vmem:[%s2250_s21 + $0x68] sm:$0xff] }
  0xd8   : > { %v1021_v37 = vadd.f32 %v1020_v22, %v873_v34 }
  0xd9   : > { %v700_v43 = vpop.f32.mrf.mxu2 }
  0xda   : > { %v789_v45 = vpop.f32.mrf.mxu3  ;;  %v701_v48 = vadd.f32 %v700_v43, %v2323_v49  ;;  %v525_v51 = vpop.f32.mrf.mxu0 }
  0xdb   : > { %v790_v50 = vadd.f32 %v789_v45, %v2318_v44  ;;  %v609_v52 = vpop.f32.mrf.mxu1  ;;  %v526_v53 = vadd.f32 %v525_v51, %v2308_v39 }
  0xdc   : > { %v610_v54 = vadd.f32 %v609_v52, %v2334_v4  ;;  %v882_v55 = vmax.f32 %v701_v48, 0.0 }
  0xdd   : > { %v883_v56 = vmax.f32 %v790_v50, 0.0  ;;  %v884_v58 = vmax.f32 %v526_v53, 0.0  ;;  %1721 = vmatmul.msk.bf16.gmra.mxu0 %vm447_vm0, %v1948_v47  ;;  %1736 = vmatmul.msk.bf16.gmra.mxu1 %vm447_vm0, %v1947_v8 }
  0xde   : > { %v877_v59 = vmax.f32 %v610_v54, 0.0  ;;  %v1060_v60 = vadd.f32 %v1059_v35, %v882_v55  ;;  %1753 = vmatmul.msk.bf16.gmra.mxu2 %vm447_vm0, %v1948_v47 }
  0xdf   : > { %v1097_v61 = vadd.f32 %v1096_v36, %v883_v56  ;;  %1769 = vmatmul.msk.bf16.gmra.mxu3 %vm447_vm0, %v1948_v47  ;;  %v987_v63 = vadd.f32 %v986_v57, %v884_v58  ;;  %v1980_v56 = vld [vmem:[%s2725_s3 + $0xa0] sm:$0xff] }
  0xe0   : > { %v1022_v0 = vadd.f32 %v1021_v37, %v877_v59  ;;  %v1988_v57 = vld [vmem:[%s2725_s3 + $0xe0] sm:$0xff]  ;;  %1422 = vmatpush.bf16.msrb.mxu2 %v1980_v56 }
  0xe1   : > { %v703_v1 = vpop.f32.mrf.mxu2  ;;  %1435 = vmatpush.bf16.msrb.mxu3 %v1988_v57 }
  0xe2   : > { %v792_v2 = vpop.f32.mrf.mxu3  ;;  %v704_v3 = vadd.f32 %v703_v1, %v2323_v49  ;;  %v527_v6 = vpop.f32.mrf.mxu0 }
  0xe3   : > { %v793_v5 = vadd.f32 %v792_v2, %v2318_v44  ;;  %v611_v7 = vpop.f32.mrf.mxu1  ;;  %v528_v11 = vadd.f32 %v527_v6, %v2308_v39 }
  0xe4   : > { %v612_v8 = vadd.f32 %v611_v7, %v2334_v4  ;;  %v886_v9 = vmax.f32 %v704_v3, 0.0 }
  0xe5   : > { %v887_v10 = vmax.f32 %v793_v5, 0.0  ;;  %v888_v17 = vmax.f32 %v528_v11, 0.0 }
  0xe6   : > { %v881_v12 = vmax.f32 %v612_v8, 0.0  ;;  %v1061_v13 = vadd.f32 %v1060_v60, %v886_v9 }
  0xe7   : > { %v1098_v14 = vadd.f32 %v1097_v61, %v887_v10  ;;  %v988_v28 = vadd.f32 %v987_v63, %v888_v17  ;;  %v1950_v61 = vld [vmem:[%s2250_s21 + $0x70] sm:$0xff]  ;;  %s269_s21 = sand.u32 1, %s2099_s25  }
  0xe8   : > { %v1023_v15 = vadd.f32 %v1022_v0, %v881_v12  ;;  %v1972_v12 = vld [vmem:[%s2725_s3 + $0x60] sm:$0xff]  ;;  %s270_s15 = scalar_lea.vmem [#allocation2], %s269_s21  ;;  %s1540_s18 = scalar_lea.sflag [#allocation3], %s269_s21 }
  0xe9   : > { %v705_v18 = vpop.f32.mrf.mxu2  ;;  %1409 = vmatpush.bf16.msra.mxu1 %v1972_v12  ;;  %s1550_s16 = sshll.u32 %s270_s15, 4  ;;  %s1551_s16 = int_to_ptr.vmem [resolvable:$true] %s1550_s16 }
  0xea   : > { %v794_v19 = vpop.f32.mrf.mxu3  ;;  %v530_v21 = vpop.f32.mrf.mxu0  ;;  %v706_v26 = vadd.f32 %v705_v18, %v2323_v49 }
  0xeb   : > { %v614_v22 = vpop.f32.mrf.mxu1  ;;  %v531_v23 = vadd.f32 %v530_v21, %v2308_v39  ;;  %v795_v27 = vadd.f32 %v794_v19, %v2318_v44 }
  0xec   : > { %v615_v25 = vadd.f32 %v614_v22, %v2334_v4  ;;  %v890_v33 = vmax.f32 %v706_v26, 0.0 }
  0xed   : > { %v892_v29 = vmax.f32 %v531_v23, 0.0  ;;  %1722 = vmatmul.msk.bf16.gmra.mxu0 %vm447_vm0, %v1949_v20  ;;  %1737 = vmatmul.msk.bf16.gmra.mxu1 %vm447_vm0, %v1948_v47  ;;  %v891_v34 = vmax.f32 %v795_v27, 0.0 }
  0xee   : > { %v885_v30 = vmax.f32 %v615_v25, 0.0  ;;  %1754 = vmatmul.msk.bf16.gmra.mxu2 %vm447_vm0, %v1949_v20  ;;  %v1062_v45 = vadd.f32 %v1061_v13, %v890_v33 }
  0xef   : > { %1770 = vmatmul.msk.bf16.gmra.mxu3 %vm447_vm0, %v1949_v20  ;;  %v989_v31 = vadd.f32 %v988_v28, %v892_v29  ;;  %v1099_v47 = vadd.f32 %v1098_v14, %v891_v34 }
  0xf0   : > { %v1024_v32 = vadd.f32 %v1023_v15, %v885_v30  ;;  %v1964_v30 = vld [vmem:[%s2725_s3 + $0x20] sm:$0xff] }
  0xf1   : > { %v708_v35 = vpop.f32.mrf.mxu2  ;;  %1396 = vmatpush.bf16.msrb.mxu0 %v1964_v30 }
  0xf2   : > { %v797_v36 = vpop.f32.mrf.mxu3  ;;  %v709_v37 = vadd.f32 %v708_v35, %v2323_v49  ;;  %v532_v41 = vpop.f32.mrf.mxu0 }
  0xf3   : > { %v798_v40 = vadd.f32 %v797_v36, %v2318_v44  ;;  %v616_v42 = vpop.f32.mrf.mxu1  ;;  %v533_v43 = vadd.f32 %v532_v41, %v2308_v39 }
  0xf4   : > { %v894_v48 = vmax.f32 %v709_v37, 0.0  ;;  %v617_v52 = vadd.f32 %v616_v42, %v2334_v4 }
  0xf5   : > { %v895_v50 = vmax.f32 %v798_v40, 0.0  ;;  %v896_v51 = vmax.f32 %v533_v43, 0.0 }
  0xf6   : > { %v1063_v53 = vadd.f32 %v1062_v45, %v894_v48  ;;  %v889_v58 = vmax.f32 %v617_v52, 0.0 }
  0xf7   : > { %v1100_v54 = vadd.f32 %v1099_v47, %v895_v50  ;;  %v990_v55 = vadd.f32 %v989_v31, %v896_v51 }
  0xf8   : > { %v1025_v7 = vadd.f32 %v1024_v32, %v889_v58 }
  0xf9   : > { %v710_v59 = vpop.f32.mrf.mxu2 }
  0xfa   : > { %v799_v60 = vpop.f32.mrf.mxu3  ;;  %v711_v62 = vadd.f32 %v710_v59, %v2323_v49  ;;  %v535_v0 = vpop.f32.mrf.mxu0 }
  0xfb   : > { %v800_v63 = vadd.f32 %v799_v60, %v2318_v44  ;;  %v619_v1 = vpop.f32.mrf.mxu1  ;;  %v536_v2 = vadd.f32 %v535_v0, %v2308_v39 }
  0xfc   : > { %v620_v3 = vadd.f32 %v619_v1, %v2334_v4  ;;  %v898_v5 = vmax.f32 %v711_v62, 0.0 }
  0xfd   : > { %v899_v6 = vmax.f32 %v800_v63, 0.0  ;;  %v900_v8 = vmax.f32 %v536_v2, 0.0  ;;  %1723 = vmatmul.msk.bf16.gmra.mxu0 %vm447_vm0, %v1950_v61  ;;  %1738 = vmatmul.msk.bf16.gmra.mxu1 %vm447_vm0, %v1949_v20 }
  0xfe   : > { %v893_v9 = vmax.f32 %v620_v3, 0.0  ;;  %v1064_v10 = vadd.f32 %v1063_v53, %v898_v5  ;;  %1755 = vmatmul.msk.bf16.gmra.mxu2 %vm447_vm0, %v1950_v61 }
  0xff   : > { %v1101_v11 = vadd.f32 %v1100_v54, %v899_v6  ;;  %1771 = vmatmul.msk.bf16.gmra.mxu3 %vm447_vm0, %v1950_v61  ;;  %v991_v13 = vadd.f32 %v990_v55, %v900_v8  ;;  %v1987_v8 = vld [vmem:[%s2725_s3 + $0xd8] sm:$0xff] }
 0x100   : > { %v1026_v14 = vadd.f32 %v1025_v7, %v893_v9  ;;  %v1979_v7 = vld [vmem:[%s2725_s3 + $0x98] sm:$0xff]  ;;  %1436 = vmatpush.bf16.msrb.mxu3 %v1987_v8 }
 0x101   : > { %v713_v15 = vpop.f32.mrf.mxu2  ;;  %1423 = vmatpush.bf16.msrb.mxu2 %v1979_v7 }
 0x102   : > { %v802_v16 = vpop.f32.mrf.mxu3  ;;  %v714_v17 = vadd.f32 %v713_v15, %v2323_v49  ;;  %v537_v19 = vpop.f32.mrf.mxu0 }
 0x103   : > { %v803_v18 = vadd.f32 %v802_v16, %v2318_v44  ;;  %v621_v20 = vpop.f32.mrf.mxu1  ;;  %v538_v21 = vadd.f32 %v537_v19, %v2308_v39 }
 0x104   : > { %v622_v22 = vadd.f32 %v621_v20, %v2334_v4  ;;  %v902_v23 = vmax.f32 %v714_v17, 0.0 }
 0x105   : > { %v903_v25 = vmax.f32 %v803_v18, 0.0  ;;  %v904_v26 = vmax.f32 %v538_v21, 0.0 }
 0x106   : > { %v897_v27 = vmax.f32 %v622_v22, 0.0  ;;  %v1065_v28 = vadd.f32 %v1064_v10, %v902_v23  ;;  %v1971_v23 = vld [vmem:[%s2725_s3 + $0x58] sm:$0xff] }
 0x107   : > { %v1102_v29 = vadd.f32 %v1101_v11, %v903_v25  ;;  %v992_v31 = vadd.f32 %v991_v13, %v904_v26  ;;  %1410 = vmatpush.bf16.msra.mxu1 %v1971_v23 }
 0x108   : > { %v1027_v32 = vadd.f32 %v1026_v14, %v897_v27  ;;  %v1963_v27 = vld [vmem:[%s2725_s3 + $0x18] sm:$0xff] }
 0x109   : > { %v715_v33 = vpop.f32.mrf.mxu2  ;;  %1397 = vmatpush.bf16.msrb.mxu0 %v1963_v27 }
 0x10a   : > { %v804_v34 = vpop.f32.mrf.mxu3  ;;  %v716_v35 = vadd.f32 %v715_v33, %v2323_v49  ;;  %v540_v37 = vpop.f32.mrf.mxu0 }
 0x10b   : > { %v805_v36 = vadd.f32 %v804_v34, %v2318_v44  ;;  %v624_v40 = vpop.f32.mrf.mxu1  ;;  %v541_v41 = vadd.f32 %v540_v37, %v2308_v39 }
 0x10c   : > { %v625_v42 = vadd.f32 %v624_v40, %v2334_v4  ;;  %v906_v43 = vmax.f32 %v716_v35, 0.0 }
 0x10d   : > { %v907_v45 = vmax.f32 %v805_v36, 0.0  ;;  %v908_v47 = vmax.f32 %v541_v41, 0.0  ;;  %1739 = vmatmul.msk.bf16.gmra.mxu1 %vm447_vm0, %v1950_v61 }
 0x10e   : > { %v901_v48 = vmax.f32 %v625_v42, 0.0  ;;  %v1066_v50 = vadd.f32 %v1065_v28, %v906_v43  ;;  %1756 = vmatmul.msk.bf16.gmra.mxu2 %vm447_vm0, %v2254_v24 }
 0x10f   : > { %v1103_v51 = vadd.f32 %v1102_v29, %v907_v45  ;;  %1772 = vmatmul.msk.bf16.gmra.mxu3 %vm447_vm0, %v2254_v24  ;;  %v993_v52 = vadd.f32 %v992_v31, %v908_v47 }
 0x110   : > { %v1028_v53 = vadd.f32 %v1027_v32, %v901_v48 }
 0x111   : > { %v718_v54 = vpop.f32.mrf.mxu2 }
 0x112   : > { %v807_v55 = vpop.f32.mrf.mxu3  ;;  %v719_v56 = vadd.f32 %v718_v54, %v2323_v49  ;;  %v542_v58 = vpop.f32.mrf.mxu0 }
 0x113   : > { %v808_v57 = vadd.f32 %v807_v55, %v2318_v44  ;;  %v626_v59 = vpop.f32.mrf.mxu1  ;;  %v543_v60 = vadd.f32 %v542_v58, %v2308_v39 }
 0x114   : > { %v627_v61 = vadd.f32 %v626_v59, %v2334_v4  ;;  %v910_v62 = vmax.f32 %v719_v56, 0.0 }
 0x115   : > { %v911_v63 = vmax.f32 %v808_v57, 0.0  ;;  %v912_v0 = vmax.f32 %v543_v60, 0.0 }
 0x116   : > { %v905_v1 = vmax.f32 %v627_v61, 0.0  ;;  %v1067_v2 = vadd.f32 %v1066_v50, %v910_v62 }
 0x117   : > { %v1104_v3 = vadd.f32 %v1103_v51, %v911_v63  ;;  %v994_v5 = vadd.f32 %v993_v52, %v912_v0 }
 0x118   : > { %v1029_v6 = vadd.f32 %v1028_v53, %v905_v1 }
 0x119   : > { %v720_v9 = vpop.f32.mrf.mxu2 }
 0x11a   : > { %v809_v10 = vpop.f32.mrf.mxu3  ;;  %v721_v11 = vadd.f32 %v720_v9, %v2323_v49  ;;  %v545_v13 = vpop.f32.mrf.mxu0 }
 0x11b   : > { %v810_v12 = vadd.f32 %v809_v10, %v2318_v44  ;;  %v629_v14 = vpop.f32.mrf.mxu1  ;;  %v546_v15 = vadd.f32 %v545_v13, %v2308_v39 }
 0x11c   : > { %v630_v16 = vadd.f32 %v629_v14, %v2334_v4  ;;  %v914_v17 = vmax.f32 %v721_v11, 0.0  ;;  %v1978_v14 = vld [vmem:[%s2725_s3 + $0x90] sm:$0xff] }
 0x11d   : > { %v915_v18 = vmax.f32 %v810_v12, 0.0  ;;  %v916_v19 = vmax.f32 %v546_v15, 0.0  ;;  %1740 = vmatmul.msk.bf16.gmra.mxu1 %vm447_vm0, %v2254_v24  ;;  %v1986_v15 = vld [vmem:[%s2725_s3 + $0xd0] sm:$0xff]  ;;  %1424 = vmatpush.bf16.msrb.mxu2 %v1978_v14 }
 0x11e   : > { %v909_v20 = vmax.f32 %v630_v16, 0.0  ;;  %v1068_v21 = vadd.f32 %v1067_v2, %v914_v17  ;;  %1437 = vmatpush.bf16.msrb.mxu3 %v1986_v15 }
 0x11f   : > { %v1105_v22 = vadd.f32 %v1104_v3, %v915_v18  ;;  %v995_v25 = vadd.f32 %v994_v5, %v916_v19 }
 0x120   : > { %v1030_v26 = vadd.f32 %v1029_v6, %v909_v20 }
 0x121   : > { %v723_v28 = vpop.f32.mrf.mxu2 }
 0x122   : > { %v812_v29 = vpop.f32.mrf.mxu3  ;;  %v724_v30 = vadd.f32 %v723_v28, %v2323_v49  ;;  %v547_v31 = vpop.f32.mrf.mxu0 }
 0x123   : > { %v813_v24 = vadd.f32 %v812_v29, %v2318_v44  ;;  %v631_v32 = vpop.f32.mrf.mxu1  ;;  %v548_v33 = vadd.f32 %v547_v31, %v2308_v39  ;;  %v1970_v29 = vld [vmem:[%s2725_s3 + $0x50] sm:$0xff] }
 0x124   : > { %v632_v34 = vadd.f32 %v631_v32, %v2334_v4  ;;  %v918_v35 = vmax.f32 %v724_v30, 0.0  ;;  %1411 = vmatpush.bf16.msra.mxu1 %v1970_v29 }
 0x125   : > { %v919_v36 = vmax.f32 %v813_v24, 0.0  ;;  %v920_v37 = vmax.f32 %v548_v33, 0.0  ;;  %v1962_v24 = vld [vmem:[%s2725_s3 + $0x10] sm:$0xff] }
 0x126   : > { %v913_v40 = vmax.f32 %v632_v34, 0.0  ;;  %v1069_v41 = vadd.f32 %v1068_v21, %v918_v35  ;;  %1398 = vmatpush.bf16.msrb.mxu0 %v1962_v24 }
 0x127   : > { %v1106_v42 = vadd.f32 %v1105_v22, %v919_v36  ;;  %v996_v43 = vadd.f32 %v995_v25, %v920_v37 }
 0x128   : > { %v1031_v45 = vadd.f32 %v1030_v26, %v913_v40 }
 0x129   : > { %v725_v47 = vpop.f32.mrf.mxu2 }
 0x12a   : > { %v814_v48 = vpop.f32.mrf.mxu3  ;;  %v726_v50 = vadd.f32 %v725_v47, %v2323_v49  ;;  %v550_v52 = vpop.f32.mrf.mxu0 }
 0x12b   : > { %v815_v51 = vadd.f32 %v814_v48, %v2318_v44  ;;  %v634_v53 = vpop.f32.mrf.mxu1  ;;  %v551_v54 = vadd.f32 %v550_v52, %v2308_v39 }
 0x12c   : > { %v635_v55 = vadd.f32 %v634_v53, %v2334_v4  ;;  %v922_v56 = vmax.f32 %v726_v50, 0.0 }
 0x12d   : > { %v923_v57 = vmax.f32 %v815_v51, 0.0  ;;  %v924_v58 = vmax.f32 %v551_v54, 0.0 }
 0x12e   : > { %v917_v59 = vmax.f32 %v635_v55, 0.0  ;;  %v1070_v60 = vadd.f32 %v1069_v41, %v922_v56 }
 0x12f   : > { %v1107_v61 = vadd.f32 %v1106_v42, %v923_v57  ;;  %v2485_v62 = vadd.f32 %v996_v43, %v924_v58 }
 0x130   : > { %v1032_v63 = vadd.f32 %v1031_v45, %v917_v59 }
 0x131   : > { %v728_v0 = vpop.f32.mrf.mxu2 }
 0x132   : > { %v817_v1 = vpop.f32.mrf.mxu3  ;;  %v729_v2 = vadd.f32 %v728_v0, %v2323_v49  ;;  %v2489_v5 = vpop.f32.mrf.mxu0 }
 0x133   : > { %v818_v3 = vadd.f32 %v817_v1, %v2318_v44  ;;  %v636_v6 = vpop.f32.mrf.mxu1  ;;  %v553_v15 = vadd.f32 %v2489_v5, %v2308_v39 }
 0x134   : > { %v637_v7 = vadd.f32 %v636_v6, %v2334_v4  ;;  %v926_v8 = vmax.f32 %v729_v2, 0.0  ;;  %v1961_v6 = vld [vmem:[%s2725_s3 + $0x8] sm:$0xff] }
 0x135   : > { %v927_v9 = vmax.f32 %v818_v3, 0.0  ;;  %v1969_v3 = vld [vmem:[%s2725_s3 + $0x48] sm:$0xff]  ;;  %1399 = vmatpush.bf16.msrb.mxu0 %v1961_v6 }
 0x136   : > { %v921_v10 = vmax.f32 %v637_v7, 0.0  ;;  %v1071_v11 = vadd.f32 %v1070_v60, %v926_v8  ;;  %v1977_v60 = vld [vmem:[%s2725_s3 + $0x88] sm:$0xff]  ;;  %1412 = vmatpush.bf16.msra.mxu1 %v1969_v3 }
 0x137   : > { %v1108_v12 = vadd.f32 %v1107_v61, %v927_v9  ;;  %v1985_v61 = vld [vmem:[%s2725_s3 + $0xc8] sm:$0xff]  ;;  %1425 = vmatpush.bf16.msrb.mxu2 %v1977_v60 }
 0x138   : > { %v1033_v13 = vadd.f32 %v1032_v63, %v921_v10  ;;  %1438 = vmatpush.bf16.msrb.mxu3 %v1985_v61 }
 0x139   : > { %v730_v16 = vpop.f32.mrf.mxu2 }
 0x13a   : > { %v819_v17 = vpop.f32.mrf.mxu3  ;;  %v731_v18 = vadd.f32 %v730_v16, %v2323_v49  ;;  %v555_v20 = vpop.f32.mrf.mxu0 }
 0x13b   : > { %v820_v19 = vadd.f32 %v819_v17, %v2318_v44  ;;  %v639_v21 = vpop.f32.mrf.mxu1  ;;  %v556_v16 = vadd.f32 %v555_v20, %v2308_v39  ;;  %v928_v17 = vmax.f32 %v553_v15, 0.0 }
 0x13c   : > { %v640_v22 = vadd.f32 %v639_v21, %v2334_v4  ;;  %v930_v23 = vmax.f32 %v731_v18, 0.0 }
 0x13d   : > { %v931_v25 = vmax.f32 %v820_v19, 0.0  ;;  %v932_v19 = vmax.f32 %v556_v16, 0.0 }
 0x13e   : > { %v925_v26 = vmax.f32 %v640_v22, 0.0  ;;  %v1072_v27 = vadd.f32 %v1071_v11, %v930_v23 }
 0x13f   : > { %v1109_v28 = vadd.f32 %v1108_v12, %v931_v25 }
 0x140   : > { %v1034_v30 = vadd.f32 %v1033_v13, %v925_v26 }
 0x141   : > { %v733_v31 = vpop.f32.mrf.mxu2 }
 0x142   : > { %v822_v32 = vpop.f32.mrf.mxu3  ;;  %v734_v33 = vadd.f32 %v733_v31, %v2323_v49  ;;  %v557_v35 = vpop.f32.mrf.mxu0 }
 0x143   : > { %v823_v34 = vadd.f32 %v822_v32, %v2318_v44  ;;  %v641_v36 = vpop.f32.mrf.mxu1  ;;  %v558_v18 = vadd.f32 %v557_v35, %v2308_v39 }
 0x144   : > { %v642_v37 = vadd.f32 %v641_v36, %v2334_v4  ;;  %v934_v40 = vmax.f32 %v734_v33, 0.0  ;;  %v1976_v33 = vld [vmem:[%s2725_s3 + $0x80] sm:$0xff] }
 0x145   : > { %v935_v41 = vmax.f32 %v823_v34, 0.0  ;;  %v1984_v34 = vld [vmem:[%s2725_s3 + $0xc0] sm:$0xff]  ;;  %1426 = vmatpush.bf16.msrb.mxu2 %v1976_v33 }
 0x146   : > { %v929_v42 = vmax.f32 %v642_v37, 0.0  ;;  %v2510_v43 = vadd.f32 %v1072_v27, %v934_v40  ;;  %v998_v27 = vadd.f32 %v2485_v62, %v928_v17  ;;  %1439 = vmatpush.bf16.msrb.mxu3 %v1984_v34 }
 0x147   : > { %v2512_v45 = vadd.f32 %v1109_v28, %v935_v41  ;;  %v936_v28 = vmax.f32 %v558_v18, 0.0  ;;  %v1960_v41 = vld [vmem:[%s2725_s3] sm:$0xff] }
 0x148   : > { %v1035_v47 = vadd.f32 %v1034_v30, %v929_v42  ;;  %v999_v29 = vadd.f32 %v998_v27, %v932_v19  ;;  %1400 = vmatpush.bf16.msrb.mxu0 %v1960_v41 }
 0x149   : > { %v2514_v48 = vpop.f32.mrf.mxu2 }
 0x14a   : > { %v2516_v50 = vpop.f32.mrf.mxu3  ;;  %v560_v51 = vpop.f32.mrf.mxu0  ;;  %v1000_v24 = vadd.f32 %v999_v29, %v936_v28  ;;  %v736_v3 = vadd.f32 %v2514_v48, %v2323_v49 }
 0x14b   : > { %v644_v52 = vpop.f32.mrf.mxu1  ;;  %v561_v21 = vadd.f32 %v560_v51, %v2308_v39  ;;  %v825_v6 = vadd.f32 %v2516_v50, %v2318_v44  ;;  %v583_v50 = vadd.f32 %v2320_v46, %v2308_v39 }
 0x14c   : > { %v645_v53 = vadd.f32 %v644_v52, %v2334_v4  ;;  %v938_v28 = vmax.f32 %v736_v3, 0.0 }
 0x14d   : > { %v940_v20 = vmax.f32 %v561_v21, 0.0  ;;  %v976_v33 = vmax.f32 %v583_v50, 0.0 }
 0x14e   : > { %v933_v54 = vmax.f32 %v645_v53, 0.0 }
 0x14f   : > { %v1001_v62 = vadd.f32 %v1000_v24, %v940_v20 }
 0x150   : > { %v2519_v55 = vadd.f32 %v1035_v47, %v933_v54 }
 0x151   : > { %v2521_v56 = vpop.f32.mrf.mxu2 }
 0x152   : > { %v2523_v57 = vpop.f32.mrf.mxu3  ;;  %v562_v58 = vpop.f32.mrf.mxu0  ;;  %v739_v17 = vadd.f32 %v2521_v56, %v2323_v49 }
 0x153   : > { %v2525_v59 = vpop.f32.mrf.mxu1  ;;  %v563_v5 = vadd.f32 %v562_v58, %v2308_v39  ;;  %v828_v18 = vadd.f32 %v2523_v57, %v2318_v44 }
 0x155   : > { %v944_v31 = vmax.f32 %v563_v5, 0.0  ;;  %v939_v5 = vmax.f32 %v825_v6, 0.0  ;;  %v943_v24 = vmax.f32 %v828_v18, 0.0 }
 0x157   : > { %v1002_v51 = vadd.f32 %v1001_v62, %v944_v31  ;;  %v1968_v62 = vld [vmem:[%s2725_s3 + $0x40] sm:$0xff] }
 0x158   : > { %1413 = vmatpush.bf16.msra.mxu1 %v1968_v62 }
 0x159   : > { %v2533_v63 = vpop.f32.mrf.mxu2 }
 0x15a   : > { %v2535_v0 = vpop.f32.mrf.mxu3  ;;  %v565_v1 = vpop.f32.mrf.mxu0  ;;  %v741_v56 = vadd.f32 %v2533_v63, %v2323_v49  ;;  %v1074_v63 = vadd.f32 %v2510_v43, %v938_v28 }
 0x15b   : > { %v2537_v2 = vpop.f32.mrf.mxu1  ;;  %v566_v30 = vadd.f32 %v565_v1, %v2308_v39  ;;  %v830_v57 = vadd.f32 %v2535_v0, %v2318_v44  ;;  %v1111_v0 = vadd.f32 %v2512_v45, %v939_v5 }
 0x15c   : > { %v946_v34 = vmax.f32 %v741_v56, 0.0 }
 0x15d   : > { %v948_v35 = vmax.f32 %v566_v30, 0.0  ;;  %v942_v30 = vmax.f32 %v739_v17, 0.0 }
 0x15f   : > { %v1003_v54 = vadd.f32 %v1002_v51, %v948_v35  ;;  %v947_v35 = vmax.f32 %v830_v57, 0.0  ;;  %v1112_v51 = vadd.f32 %v1111_v0, %v943_v24 }
 0x161   : > { %v2545_v7 = vpop.f32.mrf.mxu2 }
 0x162   : > { %v2547_v8 = vpop.f32.mrf.mxu3  ;;  %v567_v9 = vpop.f32.mrf.mxu0  ;;  %v744_v31 = vadd.f32 %v2545_v7, %v2323_v49 }
 0x163   : > { %v2549_v10 = vpop.f32.mrf.mxu1  ;;  %v568_v32 = vadd.f32 %v567_v9, %v2308_v39 }
 0x165   : > { %v952_v52 = vmax.f32 %v568_v32, 0.0 }
 0x167   : > { %v1004_v61 = vadd.f32 %v1003_v54, %v952_v52  ;;  %v950_v52 = vmax.f32 %v744_v31, 0.0 }
 0x169   : > { %v2551_v11 = vpop.f32.mrf.mxu2 }
 0x16a   : > { %v2553_v12 = vpop.f32.mrf.mxu3  ;;  %v570_v13 = vpop.f32.mrf.mxu0 }
 0x16b   : > { %v2555_v14 = vpop.f32.mrf.mxu1  ;;  %v571_v36 = vadd.f32 %v570_v13, %v2308_v39  ;;  %v835_v7 = vadd.f32 %v2553_v12, %v2318_v44  ;;  %v650_v12 = vadd.f32 %v2537_v2, %v2334_v4 }
 0x16d   : > { %v956_v58 = vmax.f32 %v571_v36, 0.0  ;;  %v955_v6 = vmax.f32 %v835_v7, 0.0 }
 0x16f   : > { %v1005_v9 = vadd.f32 %v1004_v61, %v956_v58  ;;  %v652_v61 = vadd.f32 %v2549_v10, %v2334_v4 }
 0x171   : > { %v2562_v22 = vpop.f32.mrf.mxu2 }
 0x172   : > { %v2564_v23 = vpop.f32.mrf.mxu3  ;;  %v572_v25 = vpop.f32.mrf.mxu0  ;;  %v749_v54 = vadd.f32 %v2562_v22, %v2323_v49 }
 0x173   : > { %v2566_v26 = vpop.f32.mrf.mxu1  ;;  %v573_v53 = vadd.f32 %v572_v25, %v2308_v39  ;;  %v581_v25 = vadd.f32 %v2306_v38, %v2308_v39  ;;  %v647_v38 = vadd.f32 %v2525_v59, %v2334_v4  ;;  %v746_v59 = vadd.f32 %v2551_v11, %v2323_v49 }
 0x174   : > { %v838_v58 = vadd.f32 %v2564_v23, %v2318_v44 }
 0x175   : > { %v960_v1 = vmax.f32 %v573_v53, 0.0  ;;  %v972_v32 = vmax.f32 %v581_v25, 0.0  ;;  %v937_v43 = vmax.f32 %v647_v38, 0.0  ;;  %v954_v3 = vmax.f32 %v746_v59, 0.0 }
 0x176   : > { %v959_v25 = vmax.f32 %v838_v58, 0.0 }
 0x177   : > { %v1006_v48 = vadd.f32 %v1005_v9, %v960_v1  ;;  %v1113_v1 = vadd.f32 %v1112_v51, %v947_v35 }
 0x179   : > { %v2579_v37 = vpop.f32.mrf.mxu2 }
 0x17a   : > { %v2581_v40 = vpop.f32.mrf.mxu3  ;;  %v575_v42 = vpop.f32.mrf.mxu0  ;;  %v751_v22 = vadd.f32 %v2579_v37, %v2323_v49 }
 0x17b   : > { %v2586_v47 = vpop.f32.mrf.mxu1  ;;  %v576_v60 = vadd.f32 %v575_v42, %v2308_v39  ;;  %v1075_v42 = vadd.f32 %v1074_v63, %v942_v30  ;;  %v840_v23 = vadd.f32 %v2581_v40, %v2318_v44 }
 0x17c   : > { %v660_v0 = vadd.f32 %v2586_v47, %v2334_v4 }
 0x17d   : > { %v964_v13 = vmax.f32 %v576_v60, 0.0  ;;  %v1076_v60 = vadd.f32 %v1075_v42, %v946_v34  ;;  %v963_v40 = vmax.f32 %v840_v23, 0.0 }
 0x17f   : > { %v1007_v29 = vadd.f32 %v1006_v48, %v964_v13  ;;  %v1037_v13 = vadd.f32 %v2519_v55, %v937_v43  ;;  %v1077_v17 = vadd.f32 %v1076_v60, %v950_v52  ;;  %v941_v48 = vmax.f32 %v650_v12, 0.0 }
 0x180   : > { %v655_v55 = vadd.f32 %v2555_v14, %v2334_v4 }
 0x181   : > { %v753_v15 = vpop.f32.mrf.mxu2  ;;  %v1078_v28 = vadd.f32 %v1077_v17, %v954_v3 }
 0x182   : > { %v842_v16 = vpop.f32.mrf.mxu3  ;;  %v577_v19 = vpop.f32.mrf.mxu0  ;;  %v754_v10 = vadd.f32 %v753_v15, %v2323_v49  ;;  %v657_v15 = vadd.f32 %v2566_v26, %v2334_v4  ;;  %v949_v63 = vmax.f32 %v655_v55, 0.0 }
 0x183   : > { %v2598_v21 = vpop.f32.mrf.mxu1  ;;  %v578_v27 = vadd.f32 %v577_v19, %v2308_v39  ;;  %v833_v39 = vadd.f32 %v2547_v8, %v2318_v44  ;;  %v958_v19 = vmax.f32 %v749_v54, 0.0  ;;  %v843_v50 = vadd.f32 %v842_v16, %v2318_v44 }
 0x184   : > { %v662_v26 = vadd.f32 %v2598_v21, %v2334_v4  ;;  %v957_v54 = vmax.f32 %v660_v0, 0.0 }
 0x185   : > { %v968_v20 = vmax.f32 %v578_v27, 0.0  ;;  %v951_v53 = vmax.f32 %v833_v39, 0.0  ;;  %v945_v27 = vmax.f32 %v652_v61, 0.0  ;;  %v1079_v38 = vadd.f32 %v1078_v28, %v958_v19 }
 0x186   : > { %v967_v39 = vmax.f32 %v843_v50, 0.0 }
 0x187   : > { %v1008_v46 = vadd.f32 %v1007_v29, %v968_v20  ;;  %v1114_v18 = vadd.f32 %v1113_v1, %v951_v53  ;;  %v962_v29 = vmax.f32 %v751_v22, 0.0 }
 0x189   : > { %v1009_v36 = vadd.f32 %v1008_v46, %v972_v32  ;;  %v755_v8 = vpop.f32.mrf.mxu2  ;;  %v1115_v5 = vadd.f32 %v1114_v18, %v955_v6  ;;  %v966_v32 = vmax.f32 %v754_v10, 0.0  ;;  %v1080_v62 = vadd.f32 %v1079_v38, %v962_v29 }
 0x18a   : > { %v844_v41 = vpop.f32.mrf.mxu3  ;;  %v756_v20 = vadd.f32 %v755_v8, %v2323_v49  ;;  %v953_v8 = vmax.f32 %v657_v15, 0.0 }
 0x18b   : > { %v664_v45 = vpop.f32.mrf.mxu1  ;;  %v1010_v11 = vadd.f32 %v1009_v36, %v976_v33  ;;  %v845_v30 = vadd.f32 %v844_v41, %v2318_v44  ;;  %v1116_v31 = vadd.f32 %v1115_v5, %v959_v25  ;;  %v1038_v33 = vadd.f32 %v1037_v13, %v941_v48 }
 0x18c   : > { %v970_v59 = vmax.f32 %v756_v20, 0.0  ;;  %v1081_v42 = vadd.f32 %v1080_v62, %v966_v32  ;;  %v665_v58 = vadd.f32 %v664_v45, %v2334_v4 }
 0x18d   : > { %v1011_v9 = vrot.slane %v1010_v11, 4  ;;  %v1117_v35 = vadd.f32 %v1116_v31, %v963_v40  ;;  %v971_v7 = vmax.f32 %v845_v30, 0.0  ;;  %v1039_v36 = vadd.f32 %v1038_v33, %v945_v27 }
 0x18e   : > { %v1082_v12 = vadd.f32 %v1081_v42, %v970_v59  ;;  %v965_v25 = vmax.f32 %v665_v58, 0.0  ;;  %v1997_v42 = vld [vmem:[%s2727_s5 + $0x28] sm:$0xff]  ;;  %v1992_v58 = vld [vmem:[%s2727_s5] sm:$0xff] }
 0x18f   : > { %v1012_v2 = vadd.f32 %v1011_v9, %v1010_v11  ;;  %v1118_v51 = vadd.f32 %v1117_v35, %v967_v39  ;;  %v1040_v53 = vadd.f32 %v1039_v36, %v949_v63  ;;  %v961_v9 = vmax.f32 %v662_v26, 0.0  ;;  %v1999_v26 = vld [vmem:[%s2727_s5 + $0x38] sm:$0xff] }
 0x190   : > { %1511 = vmatpush.bf16.msra.mxu0 %v1999_v26 }
 0x191   : > { %v1013_v56 = vrot.slane %v1012_v2, 2  ;;  %v758_v37 = vpop.f32.mrf.mxu2  ;;  %v1119_v61 = vadd.f32 %v1118_v51, %v971_v7  ;;  %v1041_v21 = vadd.f32 %v1040_v53, %v953_v8  ;;  %v1996_v51 = vld [vmem:[%s2727_s5 + $0x20] sm:$0xff]  ;;  %v1993_v53 = vld [vmem:[%s2727_s5 + $0x8] sm:$0xff] }
 0x192   : > { %v847_v57 = vpop.f32.mrf.mxu3  ;;  %v759_v14 = vadd.f32 %v758_v37, %v2323_v49 }
 0x193   : > { %v666_v24 = vpop.f32.mrf.mxu1  ;;  %v1014_v16 = vadd.f32 %v1013_v56, %v1012_v2  ;;  %v848_v46 = vadd.f32 %v847_v57, %v2318_v44  ;;  %v1042_v45 = vadd.f32 %v1041_v21, %v957_v54 }
 0x194   : > { %v974_v43 = vmax.f32 %v759_v14, 0.0  ;;  %v667_v13 = vadd.f32 %v666_v24, %v2334_v4 }
 0x195   : > { %v1015_v34 = vrot.slane %v1014_v16, 1  ;;  %v975_v52 = vmax.f32 %v848_v46, 0.0 }
 0x196   : > { %v1083_v22 = vadd.f32 %v1082_v12, %v974_v43  ;;  %v969_v10 = vmax.f32 %v667_v13, 0.0  ;;  %v1995_v43 = vld [vmem:[%s2727_s5 + $0x18] sm:$0xff] }
 0x197   : > { %v1016_v41 = vadd.f32 %v1015_v34, %v1014_v16  ;;  %v1120_v23 = vadd.f32 %v1119_v61, %v975_v52  ;;  %v1994_v52 = vld [vmem:[%s2727_s5 + $0x10] sm:$0xff] }
 0x199   : > { %v760_v47 = vpop.f32.mrf.mxu2  ;;  %v1128_v60 = vmul.f32 0.00390625, %v1016_v41  ;;  %v1998_v41 = vld [vmem:[%s2727_s5 + $0x30] sm:$0xff] }
 0x19a   : > { %v849_v11 = vpop.f32.mrf.mxu3  ;;  %v761_v1 = vadd.f32 %v760_v47, %v2323_v49  ;;  %v1043_v49 = vadd.f32 %v1042_v45, %v961_v9  ;;  %1512 = vmatpush.bf16.msra.mxu0 %v1998_v41 }
 0x19b   : > { %v850_v3 = vadd.f32 %v849_v11, %v2318_v44  ;;  %v669_v6 = vpop.f32.mrf.mxu1  ;;  %v1132_v17 = vpack.c.bf16 %v1128_v60, %v1128_v60  ;;  %v1200_v11 = vld [vmem:[%s2726_s4] sm:$0x1] }
 0x19c   : > { %v978_v18 = vmax.f32 %v761_v1, 0.0  ;;  %v670_v2 = vadd.f32 %v669_v6, %v2334_v4  ;;  %v1044_v28 = vadd.f32 %v1043_v49, %v965_v25 }
 0x19d   : > { %v979_v19 = vmax.f32 %v850_v3, 0.0  ;;  %1401 = vmatmul.bf16.vlgmr.msrb.gmra.mxu0 %v1132_v17 }
 0x19e   : > { %v1084_v48 = vadd.f32 %v1083_v22, %v978_v18  ;;  %v973_v5 = vmax.f32 %v670_v2, 0.0  ;;  %v1045_v57 = vadd.f32 %v1044_v28, %v969_v10  ;;  %1513 = vmatpush.bf16.msra.mxu0 %v1997_v42 }
 0x19f   : > { %v1121_v27 = vadd.f32 %v1120_v23, %v979_v19  ;;  %v1462_v23 = vld [vmem:[%s2728_s6] sm:$0x1] }
 0x1a0   : > { %v1085_v44 = vrot.slane %v1084_v48, 4  ;;  %v1046_v30 = vadd.f32 %v1045_v57, %v973_v5 }
 0x1a1   : > { %v1122_v50 = vrot.slane %v1121_v27, 4 }
 0x1a2   : > { %v1086_v55 = vadd.f32 %v1085_v44, %v1084_v48  ;;  %1514 = vmatpush.bf16.msra.mxu0 %v1996_v51 }
 0x1a3   : > { %v1123_v56 = vadd.f32 %v1122_v50, %v1121_v27  ;;  %v671_v37 = vpop.f32.mrf.mxu1 }
 0x1a4   : > { %v672_v29 = vadd.f32 %v671_v37, %v2334_v4  ;;  %v1087_v40 = vrot.slane %v1086_v55, 2 }
 0x1a5   : > { %v1124_v20 = vrot.slane %v1123_v56, 2 }
 0x1a6   : > { %v977_v24 = vmax.f32 %v672_v29, 0.0  ;;  %v1088_v38 = vadd.f32 %v1087_v40, %v1086_v55  ;;  %1515 = vmatpush.bf16.msra.mxu0 %v1995_v43 }
 0x1a7   : > { %v1125_v31 = vadd.f32 %v1124_v20, %v1123_v56 }
 0x1a8   : > { %v1047_v15 = vadd.f32 %v1046_v30, %v977_v24  ;;  %v1089_v16 = vrot.slane %v1088_v38, 1 }
 0x1a9   : > { %v1126_v32 = vrot.slane %v1125_v31, 1 }
 0x1aa   : > { %v1048_v39 = vrot.slane %v1047_v15, 4  ;;  %v1090_v14 = vadd.f32 %v1089_v16, %v1088_v38  ;;  %1516 = vmatpush.bf16.msra.mxu0 %v1994_v52 }
 0x1ab   : > { %v1127_v46 = vadd.f32 %v1126_v32, %v1125_v31 }
 0x1ac   : > { %v1049_v33 = vadd.f32 %v1048_v39, %v1047_v15  ;;  %v1130_v63 = vmul.f32 0.00390625, %v1090_v14 }
 0x1ad   : > { %v1131_v0 = vmul.f32 0.00390625, %v1127_v46 }
 0x1ae   : > { %v1050_v34 = vrot.slane %v1049_v33, 2  ;;  %v1134_v62 = vpack.c.bf16 %v1130_v63, %v1130_v63  ;;  %1517 = vmatpush.bf16.msra.mxu0 %v1993_v53 }
 0x1af   : > { %v1135_v35 = vpack.c.bf16 %v1131_v0, %v1131_v0 }
 0x1b0   : > { %v1051_v59 = vadd.f32 %v1050_v34, %v1049_v33  ;;  %1427 = vmatmul.bf16.vlgmr.msrb.gmra.mxu2 %v1134_v62 }
 0x1b1   : > { %1440 = vmatmul.bf16.vlgmr.msrb.gmra.mxu3 %v1135_v35 }
 0x1b2   : > { %v1052_v4 = vrot.slane %v1051_v59, 1  ;;  %1518 = vmatpush.bf16.msra.mxu0 %v1992_v58 }
 0x1b4   : > { %v1053_v7 = vadd.f32 %v1052_v4, %v1051_v59 }
 0x1b6   : > { %v1129_v36 = vmul.f32 0.00390625, %v1053_v7 }
 0x1b8   : > { %v1133_v8 = vpack.c.bf16 %v1129_v36, %v1129_v36 }
 0x1ba   : > { %1414 = vmatmul.bf16.vlgmr.msra.gmra.mxu1 %v1133_v8 }
 0x21a   : > { %v1402_v54 = vpop.f32.mrf.mxu0 }
 0x21b   : > { %v1403_v61 = vadd.f32 %v1402_v54, %v1200_v11 }
 0x222   : > { %v1404_v47 = vpop.f32.mrf.mxu0 }
 0x233   : > { %v1428_v60 = vpop.f32.mrf.mxu2 }
 0x234   : > { %v1441_v12 = vpop.f32.mrf.mxu3 }
 0x237   : > { %v1415_v1 = vpop.f32.mrf.mxu1 }
 0x238   : > { %v1416_v3 = vadd.f32 %v1415_v1, %v1403_v61 }
 0x23a   : > { %v1429_v6 = vadd.f32 %v1428_v60, %v1416_v3 }
 0x23b   : > { %v1430_v9 = vpop.f32.mrf.mxu2 }
 0x23c   : > { %v1442_v21 = vadd.f32 %v1441_v12, %v1429_v6  ;;  %v1443_v13 = vpop.f32.mrf.mxu3 }
 0x23e   : > { %v1445_v17 = vpack.c.bf16 %v1442_v21, %v1442_v21 }
 0x23f   : > { %v1417_v22 = vpop.f32.mrf.mxu1 }
 0x240   : > { %1519 = vmatmul.bf16.vlgmr.msra.gmra.mxu0 %v1445_v17 }
 0x2bd   : > { %v1520_v18 = vpop.f32.mrf.mxu0 }
 0x2be   : > { %v1521_v19 = vadd.f32 %v1520_v18, %v1462_v23 }
 0x2c0   : > { %v1525_v45 = vsel %vm1524_vm1, %v1521_v19, -inf }
 0x2c1   : > { %1526 = vmax.xlane.f32.xlu0 %v1525_v45 }
 0x2c5   : > { %v1522_v25 = vpop.f32.mrf.mxu0 }
 0x334   : > { %v1527_v2 = vpop.xlane.xlu0 %1526 }
 0x335   : > { %v1528_v48 = vsub.f32 %v1521_v19, %v1527_v2 }
 0x337   : > { %v1529_v27 = vmul.f32 1.442695, %v1528_v48 }
 0x339   : > { %2041 = vpow2.f32 %v1529_v27 }
 0x33f   : > { %v2042_v49 = vpop.eup %2041 }
 0x340   : > { %v1531_v10 = vsel %vm1524_vm1, %v2042_v49, 0.0 }
 0x341   : > { %1532 = vadd.xlane.f32.xlu0 %v1531_v10 }
 0x3b4   : > { %v1533_v44 = vpop.xlane.xlu0 %1532 }
 0x3b5   : > { %2043 = vrcp.f32 %v1533_v44 }
 0x3bb   : > { %v2044_v50 = vpop.eup %2043 }
 0x3bc   : > { %v1535_v28 = vmul.f32 %v2044_v50, %v2042_v49 }
 0x3be   : > { %v1536_v5 = vmax.f32 %v1535_v28, 1e-07 }
 0x3c0   : > { %v1537_v55 = vmin.f32 %v1536_v5, 0.9999999 }
 0x3c2   : > { %1538 = vst.msk [vmem:[%s270_s15] sm:$0x1] %vm1524_vm1, %v1537_v55 }
 0x3c3   : > { %2072 = shalt.err (!%p2069_p3)
}
 0x3c4   : > { %2002 = dma.vmem_to_hbm [thread:$0]  (%p2187_p5), %s1551_s16, 16, %s1553_s17, %s1540_s18  }
 0x3c5 PF: > { %p2008_p4 = scmp.ge.s32.totalorder %s2107_s27, 2  ;;  %s1564_s21 = sand.u32 1, %s2095_s24  }
 0x3c6   : > { %s1565_s9 = scalar_lea.sflag [#allocation3], %s1564_s21 }
 0x3c7   : > { %p2005_p7 = pnand %p2008_p4, %p2191_p6 }
 0x3c9   : > { %p2006_p8 = pneg %p2005_p7 }
 0x3cb   : > { %2090 = dma.done.wait (%p2006_p8), %s1565_s9, 16  }
 0x3cc   : > { %2092 = vsyncadd (%p2006_p8), %s1565_s9, 4294967280  ;;  %p17_p9 = scmp.ge.s32.totalorder %s2174_s30, 4   ;;  %s2732_s24 = smov %s2099_s25 }
 0x3cd   : > { %s2733_s25 = smov %s2103_s26  ;;  %s2734_s26 = smov %s2185_s10 }
 0x3ce   : > { %s2735_s27 = smov %s2174_s30  ;;  %19 = sbr.rel (!%p17_p9) target bundleno = 3 (0x3), region = 83 }
 0x3d3   :  { %1570 = vsyncpa [#allocation3], 1 }
 0x3d4   :  { %1572 = vsyncpa [#allocation3 + $0x1], 1 }

</bundles_post_ra>
